<compile_context>
chip_gen: v6e
topology: v6e:2x2x1
jax: 0.10.0
libtpu: 0.0.40
codegen_flags: <defaults>
</compile_context>

<pallas_src>
import math

import jax
import jax.numpy as jnp
from jax.experimental import pallas as pl
from jax.experimental.pallas import tpu as pltpu


def make_positional_encoding(d_model: int, max_len: int = 21,
                             dtype=jnp.float32) -> jnp.ndarray:
    """Builds the pe buffer exactly like the PyTorch __init__. Returns (max_len, d_model)."""
    position = jnp.arange(0, max_len, dtype=jnp.float32)[:, None]            # (max_len, 1)
    div_term = jnp.exp(
        jnp.arange(0, d_model, 2, dtype=jnp.float32) * (-math.log(10000.0) / d_model)
    )                                                                         # (ceil(d/2),)
    angles = position * div_term                                              # (max_len, ceil(d/2))
    pe = jnp.zeros((max_len, d_model), dtype=jnp.float32)
    pe = pe.at[:, 0::2].set(jnp.sin(angles))
    if d_model % 2 == 0:
        pe = pe.at[:, 1::2].set(jnp.cos(angles))
    else:
        pe = pe.at[:, 1::2].set(jnp.cos(position * div_term[: div_term.shape[0] - 1]))
    return pe.astype(dtype)


def _pe_add_kernel(x_ref, pe_ref, o_ref):
    # x_ref / o_ref: (S, tile_b, D) batch tile.
    # pe_ref: (S, D), constant block index -> DMA'd once, VMEM-resident across the grid.
    # Broadcast pe over the batch tile inside the kernel (sublane broadcast).
    o_ref[...] = x_ref[...] + pe_ref[...][:, None, :]


_MAX_BLOCK_BYTES = 2 * 1024 * 1024   # per x-block; ~4x live with double-buffered in/out
                                     # stays far below v5e's 16 MiB scoped-VMEM default.
_SPLIT_BYTES = 256 * 1024            # above this, force >=2 grid blocks (v7x megacore).


def _round_up(n: int, m: int) -> int:
    return ((n + m - 1) // m) * m


def positional_encoding_forward(x: jnp.ndarray, pe: jnp.ndarray) -> jnp.ndarray:
    """x: (S, B, D) seq-first; pe: (max_len, D). Returns x + pe[:S, None, :] in x.dtype."""
    S, B, D = x.shape
    # TODO(synk): PyTorch's f32 pe buffer would promote a bf16 x to f32; we keep x.dtype
    # (one extra rounding step for sub-f32 inputs).
    pe_s = pe[:S].astype(x.dtype)

    itemsize = jnp.dtype(x.dtype).itemsize
    pack = max(8, 32 // itemsize)            # packed sublane multiple: 8 f32, 16 bf16, 32 int8
    row_bytes = S * D * itemsize             # bytes of one batch row inside a block
    total_bytes = S * B * D * itemsize

    # Largest batch tile (multiple of `pack`) that keeps an x-block <= _MAX_BLOCK_BYTES.
    max_rows = max(pack, (_MAX_BLOCK_BYTES // row_bytes // pack) * pack)

    if total_bytes <= _SPLIT_BYTES or B <= pack:
        # Small problem (launch-overhead bound anyway) or tiny batch: one full-dim block.
        tile_b = B
    else:
        # Big enough to care: at least 2 blocks so both v7x TensorCores get work,
        # tile aligned to the packed sublane multiple, capped by the VMEM budget.
        tile_b = min(max_rows, _round_up(pl.cdiv(B, 2), pack))
    grid = (pl.cdiv(B, tile_b),)             # ragged final block is masked by Pallas

    return pl.pallas_call(
        _pe_add_kernel,
        out_shape=jax.ShapeDtypeStruct((S, B, D), x.dtype),
        grid=grid,
        in_specs=[
            pl.BlockSpec((S, tile_b, D), lambda i: (0, i, 0)),
            pl.BlockSpec((S, D), lambda i: (0, 0)),   # constant index: pe stays in VMEM
        ],
        out_specs=pl.BlockSpec((S, tile_b, D), lambda i: (0, i, 0)),
        input_output_aliases={0: 0},                  # write out in place of x when donated
        compiler_params=pltpu.CompilerParams(
            dimension_semantics=("parallel",),
        ),
    )(x, pe_s)


if __name__ == "__main__":
    # Small shapes consistent with the module: seq=8, batch=2, d_model=32, max_len=21.
    S, B, D = 8, 2, 32
    MAX_LEN = 21

    key = jax.random.PRNGKey(0)
    x = jax.random.normal(key, (S, B, D), dtype=jnp.float32)
    pe = make_positional_encoding(D, max_len=MAX_LEN)

    # Reference (same math as the PyTorch forward), computed before the aliased kernel call.
    ref = x + pe[:S][:, None, :]

    fwd = jax.jit(positional_encoding_forward)
    out = jax.block_until_ready(fwd(x, pe))

    assert out.shape == x.shape and out.dtype == x.dtype
    assert jnp.allclose(out, ref, atol=1e-6, rtol=1e-6), "mismatch vs reference"

    print("KERNEL_OK")
</pallas_src>

<mosaic_0001>
module attributes {stable_mosaic.version = 11 : i64} {
  func.func @_pe_add_kernel(%arg0: i32, %arg1: memref<8x2x32xf32, #tpu.memory_space<vmem>>, %arg2: memref<8x32xf32, #tpu.memory_space<vmem>>, %arg3: memref<8x2x32xf32, #tpu.memory_space<vmem>>) attributes {dimension_semantics = [#tpu.dimension_semantics<parallel>], iteration_bounds = array<i64: 1>, scalar_prefetch = 0 : i64, scratch_operands = 0 : i64, tpu.core_type = #tpu.core_type<tc>, window_params = [{transform_indices = @transform_0, window_bounds = array<i64: 8, 2, 32>}, {pipeline_mode = #tpu.pipeline_mode<synchronous>, transform_indices = @transform_1, window_bounds = array<i64: 8, 32>}, {transform_indices = @transform_2, window_bounds = array<i64: 8, 2, 32>}]} {
    %c0 = arith.constant 0 : index
    %c0_0 = arith.constant 0 : index
    %c0_1 = arith.constant 0 : index
    %0 = vector.load %arg1[%c0, %c0_0, %c0_1] : memref<8x2x32xf32, #tpu.memory_space<vmem>>, vector<8x2x32xf32>
    %c0_2 = arith.constant 0 : index
    %c0_3 = arith.constant 0 : index
    %1 = vector.load %arg2[%c0_2, %c0_3] : memref<8x32xf32, #tpu.memory_space<vmem>>, vector<8x32xf32>
    %2 = vector.shape_cast %1 : vector<8x32xf32> to vector<8x1x32xf32>
    %3 = vector.broadcast %2 : vector<8x1x32xf32> to vector<8x2x32xf32>
    %4 = arith.addf %0, %3 : vector<8x2x32xf32>
    %c0_4 = arith.constant 0 : index
    %c0_5 = arith.constant 0 : index
    %c0_6 = arith.constant 0 : index
    %5 = vector.load %arg3[%c0_4, %c0_5, %c0_6] : memref<8x2x32xf32, #tpu.memory_space<vmem>>, vector<8x2x32xf32>
    tpu.vector_store %arg3[%c0_4, %c0_5, %c0_6], %4 {strides = array<i32>} : memref<8x2x32xf32, #tpu.memory_space<vmem>>, vector<8x2x32xf32>,
    return
  }
  func.func @transform_0(%arg0: i32) -> (i32, i32, i32) {
    %c0_i32 = arith.constant 0 : i32
    %c0_i32_0 = arith.constant 0 : i32
    %c0_i32_1 = arith.constant 0 : i32
    return %c0_i32, %arg0, %c0_i32_0 : i32, i32, i32
  }
  func.func @transform_1(%arg0: i32) -> (i32, i32) {
    %c0_i32 = arith.constant 0 : i32
    %c0_i32_0 = arith.constant 0 : i32
    %c0_i32_1 = arith.constant 0 : i32
    return %c0_i32, %c0_i32_0 : i32, i32
  }
  func.func @transform_2(%arg0: i32) -> (i32, i32, i32) {
    %c0_i32 = arith.constant 0 : i32
    %c0_i32_0 = arith.constant 0 : i32
    %c0_i32_1 = arith.constant 0 : i32
    return %c0_i32, %arg0, %c0_i32_0 : i32, i32, i32
  }
}

</mosaic_0001>

<bundles_post_ra>
// kernel: positional_encoding_forward.1
= control target key start
LH: loop header
LB: loop body
LE: loop exit
PB: predicated region body
PF: predicated region fallthrough
CT: control target
= control target key end

     0   :  { %7 = vsyncpa [#allocation3], 0  ;;  %s251_s0 = inlined_call_operand.hbm [shape: f32[8,2,32], index: 0, kind: input, shape index: {}, may-alias: {0,2}]   ;;  %s252_s1 = inlined_call_operand.vmem [shape: f32[8,32], index: 1, kind: input, shape index: {}]   ;;  %s253_s2 = inlined_call_operand.hbm [shape: f32[8,2,32], index: 2, kind: output, shape index: {}, may-alias: {0,2}]  }
   0x1   :  { %8 = vsyncpa [#allocation4], 0  ;;  %s208_s9 = smov [#allocation2]  }
   0x2   :  { %s14_s10 = sshll.u32 %s208_s9, 4  ;;  %s15_s10 = int_to_ptr.vmem [resolvable:$true] %s14_s10 }
   0x3   :  { %s172_s11 = scalar_lea.vmem %s15_s10, 256  ;;  %p177_p1 = scmp.lt.s32.totalorder %s15_s10, %s15_s10 }
   0x4   :  { %p173_p0 = scmp.ne.s32.totalorder %s15_s10, %s172_s11  ;;  %p178_p2 = scmp.lt.s32.totalorder %s172_s11, %s172_s11 }
   0x6   :  { %p179_p3 = por %p178_p2, %p177_p1 }
   0x8   :  { %p180_p4 = pnand %p179_p3, %p173_p0 }
   0xa   :  { %183 = shalt.err (!%p180_p4)
}
   0xb   :  { %s209_s12 = smov 32   ;;  %s210_s13 = smov 2  }
   0xc   :  { %20 = dma.hbm_to_vmem [thread:$0]  %s251_s0, 256, %s15_s10, [#allocation3], %s209_s12, %s209_s12, %s210_s13  }
   0xd   :  { %204 = dma.done.wait [#allocation3], 256  }
   0xe   :  { %205 = vsyncadd [#allocation3], 4294967040  ;;  %v40_v0 = vlaneseq  ;;  %v211_v1 = vmov 1966171168   ;;  %v34_v6 = vld [vmem:[%s252_s1] sm:$0xff]  ;;  %vm133_vm0 = vcmask 254976  }
   0xf   :  { %v38_v2 = vunpack.c.l.s4 %v211_v1  ;;  %v36_v9 = vcombine.high %v34_v6, %v34_v6  ;;  %v26_v13 = vld [vmem:[#allocation2] sm:$0x3]  ;;  %v27_v18 = vld [vmem:[#allocation2 + $0x2] sm:$0x3]  ;;  %v28_v19 = vld [vmem:[#allocation2 + $0x4] sm:$0x3] }
  0x10   :  { %v41_v3 = vshrl.u32 %v40_v0, 7  ;;  %v30_v25 = vld [vmem:[#allocation2 + $0x8] sm:$0x3]  ;;  %v29_v26 = vld [vmem:[#allocation2 + $0x6] sm:$0x3]  ;;  %s212_s0 = smov [#allocation5]  }
  0x11   :  { %v39_v4 = vunpack.c.0.s8 %v38_v2  ;;  %v31_v33 = vld [vmem:[#allocation2 + $0xa] sm:$0x3]  ;;  %v32_v34 = vld [vmem:[#allocation2 + $0xc] sm:$0x3]  ;;  %v33_v40 = vld [vmem:[#allocation2 + $0xe] sm:$0x3] }
  0x12   :  { %v87_v8 = vsub.s32 0, %v41_v3  ;;  %s147_s1 = sshll.u32 %s212_s0, 4  ;;  %s148_s1 = int_to_ptr.vmem [resolvable:$true] %s147_s1 }
  0x13   :  { %v42_v5 = vsub.s32 %v39_v4, %v41_v3  ;;  %s184_s18 = scalar_lea.vmem %s148_s1, 256  ;;  %p189_p6 = scmp.lt.s32.totalorder %s148_s1, %s148_s1 }
  0x14   :  { %p185_p5 = scmp.ne.s32.totalorder %s148_s1, %s184_s18  ;;  %p190_p7 = scmp.lt.s32.totalorder %s184_s18, %s184_s18 }
  0x15   :  { %v43_v7 = vrot.slane %v34_v6, %v42_v5  ;;  %v50_v12 = vrot.slane %v36_v9, %v42_v5 }
  0x16   :  { %p191_p8 = por %p190_p7, %p189_p6 }
  0x17   :  { %v59_v10 = vrot.slane %v43_v7, %v42_v5  ;;  %v51_v11 = vcombine.high %v43_v7, %v43_v7  ;;  %v66_v17 = vrot.slane %v50_v12, %v42_v5  ;;  %v52_v20 = vcombine.high %v50_v12, %v50_v12 }
  0x18   :  { %p192_p9 = pnand %p191_p8, %p185_p5 }
  0x19   :  { %v88_v14 = vrot.slane %v59_v10, %v87_v8  ;;  %v73_v15 = vrot.slane %v51_v11, %v42_v5  ;;  %v81_v16 = vcombine.high %v59_v10, %v59_v10  ;;  %v104_v27 = vrot.slane %v66_v17, %v87_v8 }
  0x1a   :  { %v80_v28 = vrot.slane %v52_v20, %v42_v5  ;;  %v82_v29 = vcombine.high %v66_v17, %v66_v17 }
  0x1b   :  { %v125_v21 = vadd.f32 %v88_v14, %v26_v13  ;;  %v92_v22 = vrot.slane %v73_v15, %v87_v8  ;;  %v96_v23 = vrot.slane %v81_v16, %v87_v8  ;;  %v83_v24 = vcombine.high %v73_v15, %v73_v15 }
  0x1c   :  { %v129_v35 = vadd.f32 %v104_v27, %v30_v25  ;;  %v108_v36 = vrot.slane %v80_v28, %v87_v8  ;;  %v112_v37 = vrot.slane %v82_v29, %v87_v8  ;;  %v84_v38 = vcombine.high %v80_v28, %v80_v28 }
  0x1d   :  { %134 = vst.msk [vmem:[#allocation5] sm:$0x3] %vm133_vm0, %v125_v21  ;;  %v126_v30 = vadd.f32 %v92_v22, %v27_v18  ;;  %v127_v31 = vadd.f32 %v96_v23, %v28_v19  ;;  %v100_v32 = vrot.slane %v83_v24, %v87_v8 }
  0x1e   :  { %138 = vst.msk [vmem:[#allocation5 + $0x8] sm:$0x3] %vm133_vm0, %v129_v35  ;;  %v130_v41 = vadd.f32 %v108_v36, %v31_v33  ;;  %v131_v42 = vadd.f32 %v112_v37, %v32_v34  ;;  %v116_v43 = vrot.slane %v84_v38, %v87_v8 }
  0x1f   :  { %135 = vst.msk [vmem:[#allocation5 + $0x2] sm:$0x3] %vm133_vm0, %v126_v30  ;;  %136 = vst.msk [vmem:[#allocation5 + $0x4] sm:$0x3] %vm133_vm0, %v127_v31  ;;  %v128_v39 = vadd.f32 %v100_v32, %v29_v26 }
  0x20   :  { %139 = vst.msk [vmem:[#allocation5 + $0xa] sm:$0x3] %vm133_vm0, %v130_v41  ;;  %140 = vst.msk [vmem:[#allocation5 + $0xc] sm:$0x3] %vm133_vm0, %v131_v42  ;;  %v132_v44 = vadd.f32 %v116_v43, %v33_v40 }
  0x21   :  { %137 = vst.msk [vmem:[#allocation5 + $0x6] sm:$0x3] %vm133_vm0, %v128_v39 }
  0x22   :  { %141 = vst.msk [vmem:[#allocation5 + $0xe] sm:$0x3] %vm133_vm0, %v132_v44 }
  0x23   :  { %195 = shalt.err (!%p192_p9)
}
  0x24   :  { %153 = dma.vmem_to_hbm [thread:$0]  %s148_s1, 256, %s253_s2, [#allocation4], %s209_s12, %s209_s12, %s210_s13  }
  0x25   :  { %206 = dma.done.wait [#allocation4], 256  }
  0x26   :  { %207 = vsyncadd [#allocation4], 4294967040 }
  0x27   :  { %157 = vsyncpa [#allocation3], 1 }
  0x28   :  { %158 = vsyncpa [#allocation4], 1 }

</bundles_post_ra>
